<compile_context>
chip_gen: v7x
topology: tpu7x:2x2x1
jax: 0.10.0
libtpu: 0.0.40
codegen_flags: <defaults>
</compile_context>

<pallas_src>
import functools

import jax
import jax.numpy as jnp
from jax.experimental import pallas as pl
from jax.experimental.pallas import tpu as pltpu


def _round_up(x, m):
    return (x + m - 1) // m * m


def _patch_proj_kernel(x_ref, w_ref, b_ref, o_ref):
    # x_ref: (tm, K_pad) patches tile (streams), w_ref: (K_pad, N_pad) resident
    # weight, b_ref: (1, N_pad) f32 resident bias, o_ref: (tm, N_pad).
    acc = jnp.dot(x_ref[...], w_ref[...], preferred_element_type=jnp.float32)
    o_ref[...] = (acc + b_ref[...]).astype(o_ref.dtype)


_VMEM_LIMIT_BYTES = 64 * 1024 * 1024   # raised scoped limit; == v7x physical
_TILE_VMEM_BUDGET = 40 * 1024 * 1024   # conservative tile budget across gens
_STEP_OVERHEAD_ROWS = 128              # ~0.35 us/step expressed in "rows" of DMA


def _choose_tm(M, K_pad, N_pad, in_bytes, out_bytes, sublane):
    """Pick the M-tile size.

    Constraints / preferences:
      - double-buffered (patches + output) tiles plus resident weight fit the
        VMEM budget,
      - tm is a multiple of the packed sublane count (16 for bf16, 8 for f32),
      - minimize padded work + per-grid-step overhead,
      - prefer >= 2 grid blocks so v7x's two TensorCores both get work.
    """
    resident = 2 * K_pad * N_pad * in_bytes + 8 * N_pad * 4   # weight(x2) + bias
    per_row = 2 * (K_pad * in_bytes + N_pad * out_bytes)      # double-buffered
    max_rows = max(sublane, (_TILE_VMEM_BUDGET - resident) // per_row)
    max_rows = max(sublane, max_rows // sublane * sublane)

    candidates = sorted({c for c in (2048, 1024, 512, 256, 128, 64, 32, 16, 8,
                                     sublane)
                         if c % sublane == 0 and c <= max_rows})
    best = None
    for t in candidates:
        m_pad = _round_up(max(M, 1), t)
        n_blocks = m_pad // t
        cost = m_pad + n_blocks * _STEP_OVERHEAD_ROWS
        key = (0 if n_blocks >= 2 else 1, cost, -t)
        if best is None or key < best[0]:
            best = (key, t, m_pad)
    return best[1], best[2]


@functools.partial(jax.jit,
                   static_argnames=("patch_size", "compute_dtype", "out_dtype"))
def patch_embed2_forward(x, weight, bias, patch_size,
                         compute_dtype=jnp.bfloat16, out_dtype=None):
    """Equivalent of PatchEmbed2.forward.

    x:      (B, C, H, W)   NCHW, like PyTorch
    weight: (E, C, p, p)   Conv2d weight
    bias:   (E,)           Conv2d bias
    compute_dtype: dtype of the MXU operands (default bf16; accumulation f32).
    out_dtype: dtype of the result (default: x.dtype).
    returns (B, E, H // p, W // p)   (NCHW, like Conv2d)
    """
    B, C, H, W = x.shape
    E = weight.shape[0]
    p = patch_size
    assert H % p == 0 and W % p == 0, "image size must be divisible by patch size"
    nH, nW = H // p, W // p

    if out_dtype is None:
        out_dtype = x.dtype
    if compute_dtype is None:
        compute_dtype = x.dtype

    # --- patch extraction (reshape/transpose glue, stays in XLA); the cast to
    # the compute dtype is fused into this transpose so it's not an extra HBM
    # pass.
    patches = x.reshape(B, C, nH, p, nW, p)
    patches = jnp.transpose(patches, (0, 2, 4, 1, 3, 5))
    patches = patches.reshape(B * nH * nW, C * p * p).astype(compute_dtype)

    # conv weight (E, C, p, p) -> GEMM weight (C*p*p, E); matches the
    # (C, kh, kw) flattening order of the patches above.
    w_mat = weight.reshape(E, C * p * p).T.astype(compute_dtype)
    b_mat = bias.reshape(1, E).astype(jnp.float32)

    M, K = patches.shape
    N = E

    # --- pad K (contraction) and N (lanes) to multiples of 128 ---
    K_pad = _round_up(K, 128)
    N_pad = _round_up(N, 128)
    if K_pad != K:
        patches = jnp.pad(patches, ((0, 0), (0, K_pad - K)))
        w_mat = jnp.pad(w_mat, ((0, K_pad - K), (0, 0)))
    if N_pad != N:
        w_mat = jnp.pad(w_mat, ((0, 0), (0, N_pad - N)))
        b_mat = jnp.pad(b_mat, ((0, 0), (0, N_pad - N)))

    in_bytes = jnp.dtype(compute_dtype).itemsize
    out_bytes = jnp.dtype(out_dtype).itemsize
    sublane = 16 if in_bytes < 4 else 8
    tm, M_pad = _choose_tm(M, K_pad, N_pad, in_bytes, out_bytes, sublane)
    if M_pad != M:
        patches = jnp.pad(patches, ((0, M_pad - M), (0, 0)))

    grid = (M_pad // tm,)

    cost = pl.CostEstimate(
        flops=2 * M_pad * K_pad * N_pad,
        transcendentals=0,
        bytes_accessed=(M_pad * K_pad * in_bytes
                        + K_pad * N_pad * in_bytes
                        + N_pad * 4
                        + M_pad * N_pad * out_bytes),
    )

    out = pl.pallas_call(
        _patch_proj_kernel,
        out_shape=jax.ShapeDtypeStruct((M_pad, N_pad), out_dtype),
        grid=grid,
        in_specs=[
            # patches tile: streams over the M axis.
            pl.BlockSpec((tm, K_pad), lambda i: (i, 0)),
            # full weight: constant index -> stays resident, no re-DMA.
            pl.BlockSpec((K_pad, N_pad), lambda i: (0, 0)),
            # full bias: resident.
            pl.BlockSpec((1, N_pad), lambda i: (0, 0)),
        ],
        out_specs=pl.BlockSpec((tm, N_pad), lambda i: (i, 0)),
        compiler_params=pltpu.CompilerParams(
            dimension_semantics=("parallel",),
            vmem_limit_bytes=_VMEM_LIMIT_BYTES),
        cost_estimate=cost,
    )(patches, w_mat, b_mat)

    # strip padding, then (B*nH*nW, E) -> (B, nH, nW, E) -> (B, E, nH, nW)
    out = out[:M, :N]
    out = out.reshape(B, nH, nW, E)
    out = jnp.transpose(out, (0, 3, 1, 2))
    return out


if __name__ == "__main__":
    # Small shapes consistent with the module: img_size=16, patch_size=4,
    # in_chans=4, embed_dim=32, batch=2.
    B, C, H, W = 2, 4, 16, 16
    p = 4
    E = 32

    key = jax.random.PRNGKey(0)
    kx, kw, kb = jax.random.split(key, 3)
    x = jax.random.normal(kx, (B, C, H, W), dtype=jnp.float32)
    weight = jax.random.normal(kw, (E, C, p, p), dtype=jnp.float32) * 0.02
    bias = jax.random.normal(kb, (E,), dtype=jnp.float32) * 0.02

    # Reference: lax conv with the same semantics as nn.Conv2d(stride=kernel).
    ref = jax.lax.conv_general_dilated(
        x, weight, window_strides=(p, p), padding="VALID",
        dimension_numbers=("NCHW", "OIHW", "NCHW"),
    ) + bias.reshape(1, E, 1, 1)

    # f32-operand path (exact-ish).
    out_f32 = patch_embed2_forward(x, weight, bias, p, compute_dtype=jnp.float32)
    out_f32 = jax.block_until_ready(out_f32)
    assert out_f32.shape == (B, E, H // p, W // p)
    assert jnp.allclose(out_f32, ref, atol=1e-4, rtol=1e-4)

    # Default path: bf16 MXU operands, f32 accumulation (loose tolerance).
    out_bf16 = patch_embed2_forward(x, weight, bias, p)
    out_bf16 = jax.block_until_ready(out_bf16)
    assert out_bf16.shape == (B, E, H // p, W // p)
    assert jnp.allclose(out_bf16, ref, atol=5e-2, rtol=5e-2)

    print("KERNEL_OK")
</pallas_src>

<mosaic_0001>
module attributes {stable_mosaic.version = 11 : i64} {
  func.func @_patch_proj_kernel(%arg0: i32, %arg1: memref<16x128xf32, #tpu.memory_space<vmem>>, %arg2: memref<128x128xf32, #tpu.memory_space<vmem>>, %arg3: memref<1x128xf32, #tpu.memory_space<vmem>>, %arg4: memref<16x128xf32, #tpu.memory_space<vmem>>) attributes {dimension_semantics = [#tpu.dimension_semantics<parallel>], iteration_bounds = array<i64: 2>, scalar_prefetch = 0 : i64, scratch_operands = 0 : i64, tpu.core_type = #tpu.core_type<tc>, window_params = [{transform_indices = @transform_0, window_bounds = array<i64: 16, 128>}, {pipeline_mode = #tpu.pipeline_mode<synchronous>, transform_indices = @transform_1, window_bounds = array<i64: 128, 128>}, {pipeline_mode = #tpu.pipeline_mode<synchronous>, transform_indices = @transform_2, window_bounds = array<i64: 1, 128>}, {transform_indices = @transform_3, window_bounds = array<i64: 16, 128>}]} {
    %c0 = arith.constant 0 : index
    %c0_0 = arith.constant 0 : index
    %0 = vector.load %arg1[%c0, %c0_0] : memref<16x128xf32, #tpu.memory_space<vmem>>, vector<16x128xf32>
    %c0_1 = arith.constant 0 : index
    %c0_2 = arith.constant 0 : index
    %1 = vector.load %arg2[%c0_1, %c0_2] : memref<128x128xf32, #tpu.memory_space<vmem>>, vector<128x128xf32>
    %cst = arith.constant dense<0.000000e+00> : vector<16x128xf32>
    %2 = tpu.matmul %0, %1, %cst {dimension_numbers = #tpu.dot_dimension_numbers<[1], [0], [0], [1], [0, 0, 1, 1], [], []>} : vector<16x128xf32>, vector<128x128xf32>, vector<16x128xf32> -> vector<16x128xf32>
    %c0_3 = arith.constant 0 : index
    %c0_4 = arith.constant 0 : index
    %3 = vector.load %arg3[%c0_3, %c0_4] : memref<1x128xf32, #tpu.memory_space<vmem>>, vector<1x128xf32>
    %4 = vector.broadcast %3 : vector<1x128xf32> to vector<16x128xf32>
    %5 = arith.addf %2, %4 : vector<16x128xf32>
    %c0_5 = arith.constant 0 : index
    %c0_6 = arith.constant 0 : index
    %6 = vector.load %arg4[%c0_5, %c0_6] : memref<16x128xf32, #tpu.memory_space<vmem>>, vector<16x128xf32>
    tpu.vector_store %arg4[%c0_5, %c0_6], %5 {strides = array<i32>} : memref<16x128xf32, #tpu.memory_space<vmem>>, vector<16x128xf32>,
    return
  }
  func.func @transform_0(%arg0: i32) -> (i32, i32) {
    %c0_i32 = arith.constant 0 : i32
    %c0_i32_0 = arith.constant 0 : i32
    return %arg0, %c0_i32 : i32, i32
  }
  func.func @transform_1(%arg0: i32) -> (i32, i32) {
    %c0_i32 = arith.constant 0 : i32
    %c0_i32_0 = arith.constant 0 : i32
    %c0_i32_1 = arith.constant 0 : i32
    return %c0_i32, %c0_i32_0 : i32, i32
  }
  func.func @transform_2(%arg0: i32) -> (i32, i32) {
    %c0_i32 = arith.constant 0 : i32
    %c0_i32_0 = arith.constant 0 : i32
    %c0_i32_1 = arith.constant 0 : i32
    return %c0_i32, %c0_i32_0 : i32, i32
  }
  func.func @transform_3(%arg0: i32) -> (i32, i32) {
    %c0_i32 = arith.constant 0 : i32
    %c0_i32_0 = arith.constant 0 : i32
    return %arg0, %c0_i32 : i32, i32
  }
}

</mosaic_0001>

<bundles_post_ra>
// kernel: patch_embed2_forward.1
= control target key start
LH: loop header
LB: loop body
LE: loop exit
PB: predicated region body
PF: predicated region fallthrough
CT: control target
= control target key end

     0   :  { %8 = vsyncpa [#allocation3], 0  ;;  %s1038_s0 = inlined_call_operand.hbm [shape: f32[32,128], index: 0, kind: input, shape index: {}]   ;;  %s1039_s1 = inlined_call_operand.hbm [shape: f32[128,128], index: 1, kind: input, shape index: {}]   ;;  %s1040_s2 = inlined_call_operand.hbm [shape: f32[1,128], index: 2, kind: input, shape index: {}]   ;;  %s1041_s3 = inlined_call_operand.hbm [shape: f32[32,128], index: 3, kind: output, shape index: {}]  }
   0x1   :  { %10 = vsyncpa [#allocation3 + $0x1], 0 }
   0x2   :  { %11 = vsyncpa [#allocation6], 0 }
   0x3   :  { %12 = vsyncpa [#allocation4], 0 }
   0x4   :  { %14 = vsyncpa [#allocation4 + $0x1], 0  ;;  %s789_s12 = smov 0   ;;  %s791_s13 = smov 0  }
   0x5   :  { %s793_s14 = smov 0   ;;  %s795_s15 = smov 0  }
   0x6 LB: > { %s810_s16 = sadd.s32 4294967295, %s759_s15   ;;  %s426_s17 = sadd.s32 4294967294, %s759_s15   ;;  %s759_s15 = sphi %s795_s15, %s1061_s15   ;;  %s755_s14 = sphi %s793_s14, %s1060_s14   ;;  %s751_s13 = sphi %s791_s13, %s1059_s13   ;;  %s747_s12 = sphi %s789_s12, %s1058_s12  }
   0x7   : > { %p40_p0 = scmp.ne.s32.totalorder %s751_s13, %s747_s12  ;;  %p1042_p1 = scmp.eq.s32.totalorder %s810_s16, 0 }
   0x8   : > { %p112_p3 = scmp.eq.s32.totalorder %s426_s17, 1  ;;  %p427_p5 = scmp.ge.s32.totalorder %s759_s15, 1 }
   0x9   : > { %p819_p4 = por %p1042_p1, %p40_p0  ;;  %p119_p7 = scmp.lt.s32.totalorder %s759_s15, 3 }
   0xa   : > { %p824_p6 = por %p112_p3, %p40_p0  ;;  %s761_s21 = smov [#allocation5]  }
   0xb   : > { %s1045_s18 = scalar_select %p819_p4, 1, 0 }
   0xc   : > { %s1046_s19 = scalar_select %p824_p6, 1, 0 }
   0xd   : > { %p829_p8 = pnand %p427_p5, %p119_p7  ;;  %s131_s22 = sshll.u32 %s761_s21, 4  ;;  %s833_s22 = int_to_ptr.vmem [resolvable:$true] %s131_s22 }
   0xe   : > { %s762_s24 = smov [#allocation7]   ;;  %s603_s28 = scalar_lea.hbm %s1039_s1, 2048 }
   0xf   : > { %p544_p9 = pneg %p829_p8  ;;  %s145_s25 = sshll.u32 %s762_s24, 4  ;;  %s844_s25 = int_to_ptr.vmem [resolvable:$true] %s145_s25 }
  0x10   : > { %p604_p12 = scmp.ne.s32.totalorder %s1039_s1, %s603_s28  ;;  %p610_p5 = scmp.lt.u32.totalorder %s603_s28, %s1039_s1 }
  0x11   : > { %p840_p11 = pnand %p544_p9, %p1042_p1 }
  0x13   : > { %p605_p13 = pneg %p840_p11 }
  0x15   : > { %p606_p0 = pnand %p605_p13, %p604_p12 }
  0x17   : > { %p607_p3 = pneg %p606_p0 }
  0x19   : > { %p612_p7 = pnand %p610_p5, %p607_p3 }
  0x1b   : > { %615 = shalt.err (!%p612_p7)
}
  0x1c   : > { %s616_s6 = scalar_lea.vmem %s833_s22, 2048  ;;  %p624_p2 = scmp.lt.s32.totalorder %s833_s22, %s833_s22 }
  0x1d   : > { %p617_p9 = scmp.ne.s32.totalorder %s833_s22, %s616_s6  ;;  %p625_p12 = scmp.lt.s32.totalorder %s616_s6, %s616_s6 }
  0x1f   : > { %p619_p10 = pnand %p617_p9, %p605_p13  ;;  %p626_p0 = por %p625_p12, %p624_p2 }
  0x21   : > { %p620_p1 = pneg %p619_p10 }
  0x23   : > { %p627_p6 = pnand %p626_p0, %p620_p1 }
  0x25   : > { %630 = shalt.err (!%p627_p6)
}
  0x26   : > { %s763_s7 = smov 128   ;;  %s764_s8 = smov 8  }
  0x27   : > { %547 = dma.hbm_to_vmem [thread:$0]  (!%p840_p11), %s1039_s1, 2048, %s833_s22, [#allocation6], %s763_s7, %s763_s7, %s764_s8  }
  0x28   : > { %s631_s21 = scalar_lea.hbm %s1040_s2, 16 }
  0x29   : > { %p632_p1 = scmp.ne.s32.totalorder %s1040_s2, %s631_s21  ;;  %p638_p10 = scmp.lt.u32.totalorder %s631_s21, %s1040_s2 }
  0x2b   : > { %p634_p2 = pnand %p632_p1, %p605_p13 }
  0x2d   : > { %p635_p6 = pneg %p634_p2 }
  0x2f   : > { %p640_p3 = pnand %p638_p10, %p635_p6 }
  0x31   : > { %643 = shalt.err (!%p640_p3)
}
  0x32   : > { %s644_s22 = scalar_lea.vmem %s844_s25, 16  ;;  %s651_s29 = scalar_lea.vmem %s844_s25, 32 }
  0x33   : > { %p645_p5 = scmp.ne.s32.totalorder %s844_s25, %s644_s22  ;;  %p652_p12 = scmp.lt.s32.totalorder %s844_s25, %s844_s25 }
  0x34   : > { %p653_p0 = scmp.lt.s32.totalorder %s651_s29, %s644_s22 }
  0x35   : > { %p647_p7 = pnand %p645_p5, %p605_p13 }
  0x36   : > { %p654_p1 = por %p653_p0, %p652_p12 }
  0x37   : > { %p648_p9 = pneg %p647_p7 }
  0x39   : > { %p655_p2 = pnand %p654_p1, %p648_p9 }
  0x3b   : > { %658 = shalt.err (!%p655_p2)
}
  0x3c   : > { %550 = dma.hbm_to_vmem [thread:$0]  (!%p840_p11), %s1040_s2, 16, %s844_s25, [#allocation6]  }
  0x3d   : > { %s903_s5 = sadd.s32 1, %s759_s15   ;;  %s27_s23 = sadd.s32 1, %s755_s14 }
  0x3e   : > { %s24_s6 = ssub.s32 %s759_s15, %s903_s5  ;;  %p34_p13 = scmp.ne.s32.totalorder %s755_s14, %s751_s13 }
  0x3f   : > { %p25_p6 = scmp.eq.s32.totalorder %s24_s6, 0  ;;  %p35_p10 = scmp.eq.s32.totalorder %s759_s15, 0 }
  0x40   : > { %p1049_p3 = scmp.eq.s32.totalorder %s810_s16, 1  ;;  %p561_p7 = scmp.lt.s32.totalorder %s759_s15, 2 }
  0x41   : > { %s919_s10 = scalar_select %p25_p6, %s755_s14, %s27_s23  }
  0x42   : > { %p913_p5 = por %p1049_p3, %p34_p13  ;;  %p36_p9 = por %p35_p10, %p34_p13 }
  0x43   : > { %s156_s11 = sand.u32 1, %s755_s14   ;;  %s445_s25 = sshll.u32 %s759_s15, 8 }
  0x44   : > { %s1050_s9 = scalar_select %p913_p5, 1, 0 }
  0x45   : > { %s431_s17 = sshll.u32 %s156_s11, 4  ;;  %s926_s26 = scalar_lea.hbm %s1038_s0, %s445_s25 }
  0x46   : > { %s160_s27 = scalar_lea.vmem [#allocation2], %s431_s17  ;;  %p930_p11 = pnand %p561_p7, %p36_p9 }
  0x47   : > { %s167_s28 = sshll.u32 %s160_s27, 4  ;;  %s934_s29 = scalar_lea.sflag [#allocation3], %s156_s11  ;;  %s928_s28 = int_to_ptr.vmem [resolvable:$true] %s167_s28 }
  0x48   : > { %s659_s30 = scalar_lea.hbm %s926_s26, 256  ;;  %p661_p0 = pneg %p930_p11 }
  0x49   : > { %p660_p12 = scmp.ne.s32.totalorder %s926_s26, %s659_s30  ;;  %s664_s6 = scalar_lea.hbm %s1038_s0, 512 }
  0x4a   : > { %p665_p13 = scmp.lt.u32.totalorder %s926_s26, %s1038_s0  ;;  %p666_p6 = scmp.lt.u32.totalorder %s664_s6, %s659_s30 }
  0x4b   : > { %p662_p1 = pnand %p661_p0, %p660_p12  ;;  %p668_p3 = scmp.lt.u32.totalorder %s659_s30, %s926_s26 }
  0x4c   : > { %p667_p10 = por %p666_p6, %p665_p13 }
  0x4d   : > { %p663_p2 = pneg %p662_p1 }
  0x4e   : > { %p669_p7 = por %p668_p3, %p667_p10 }
  0x50   : > { %p670_p9 = pnand %p669_p7, %p663_p2 }
  0x52   : > { %673 = shalt.err (!%p670_p9)
}
  0x53   : > { %s674_s11 = scalar_lea.vmem %s928_s28, 256  ;;  %s765_s21 = smov [#allocation2]  }
  0x54   : > { %p675_p12 = scmp.ne.s32.totalorder %s928_s28, %s674_s11  ;;  %s679_s24 = sshll.u32 %s765_s21, 4  ;;  %s680_s24 = int_to_ptr.vmem [resolvable:$false] %s679_s24 }
  0x55   : > { %s681_s27 = scalar_lea.vmem %s680_s24, 512  ;;  %p682_p4 = scmp.lt.s32.totalorder %s928_s28, %s680_s24 }
  0x56   : > { %p677_p1 = pnand %p675_p12, %p661_p0  ;;  %p683_p13 = scmp.lt.s32.totalorder %s681_s27, %s674_s11 }
  0x58   : > { %p678_p5 = pneg %p677_p1  ;;  %p684_p6 = por %p683_p13, %p682_p4 }
  0x5a   : > { %p685_p10 = pnand %p684_p6, %p678_p5 }
  0x5c   : > { %688 = shalt.err (!%p685_p10)
}
  0x5d   : > { %554 = dma.hbm_to_vmem [thread:$0]  (!%p930_p11), %s926_s26, 256, %s928_s28, %s934_s29, %s763_s7, %s763_s7, %s764_s8  }
  0x5e   : > { %179 = sbr.rel (%p829_p8) target bundleno = 370 (0x172), region = 32  ;;  %s968_s30 = sand.u32 (!%p829_p8), 1, %s751_s13  }
  0x5f   : > { %s435_s4 = sshll.u32 (!%p829_p8), %s968_s30, 4  ;;  %s182_s23 = scalar_lea.sflag (!%p829_p8), [#allocation3], %s968_s30 }
  0x60   : > { %s974_s22 = scalar_lea.vmem (!%p829_p8), [#allocation2], %s435_s4  ;;  %p1052_p4 = scmp.ne.s32.totalorder (!%p829_p8), %s1045_s18, 0 }
  0x65   : > { %734 = dma.done.wait (%p1052_p4), %s182_s23, 256  }
  0x66   : > { %736 = vsyncadd (%p1052_p4), %s182_s23, 4294967040  ;;  %p1053_p5 = scmp.eq.s32.totalorder %s810_s16, 0 }
  0x68   : > { %738 = dma.done.wait (%p1053_p5), [#allocation6], 2064   ;;  %p1054_p8 = pmov %p1053_p5 }
  0x69   : > { %v220_v0 = vld [vmem:[#allocation5] sm:$0xff]  ;;  %v221_v1 = vld [vmem:[#allocation5 + $0x8] sm:$0xff]  ;;  %v222_v2 = vld [vmem:[#allocation5 + $0x10] sm:$0xff]  ;;  %s215_s18 = scalar_lea.vmem [#allocation8], %s435_s4  ;;  %s446_s7 = sshll.u32 %s810_s16, 8 }
  0x6a   : > { %740 = vsyncadd (%p1054_p8), [#allocation6], 4294965232  ;;  %v500_v3 = vpack.c.bf16 %v221_v1, %v220_v0  ;;  %v223_v4 = vld [vmem:[#allocation5 + $0x18] sm:$0xff]  ;;  %v224_v6 = vld [vmem:[#allocation5 + $0x20] sm:$0xff]  ;;  %s334_s20 = sshll.u32 %s215_s18, 4  ;;  %s994_s28 = scalar_lea.hbm %s1041_s3, %s446_s7  ;;  %s989_s20 = int_to_ptr.vmem [resolvable:$true] %s334_s20 }
  0x6b   : > { %v504_v5 = vpack.c.bf16 %v223_v4, %v222_v2  ;;  %v225_v7 = vld [vmem:[#allocation5 + $0x28] sm:$0xff]  ;;  %v218_v9 = vld [vmem:[%s974_s22] sm:$0xff]  ;;  %v227_v11 = vld [vmem:[#allocation5 + $0x38] sm:$0xff]  ;;  %s321_s29 = scalar_lea.sflag [#allocation4], %s968_s30  ;;  %s689_s6 = scalar_lea.vmem %s989_s20, 256 }
  0x6c   : > { %501 = vmatprep.subr.bf16.mxu0 %v500_v3  ;;  %v508_v8 = vpack.c.bf16 %v225_v7, %v224_v6  ;;  %v226_v10 = vld [vmem:[#allocation5 + $0x30] sm:$0xff]  ;;  %497 = vmatprep.mubr.f32.mxu0 %v218_v9  ;;  %v228_v13 = vld [vmem:[#allocation5 + $0x40] sm:$0xff]  ;;  %v229_v14 = vld [vmem:[#allocation5 + $0x48] sm:$0xff]  ;;  %p690_p11 = scmp.ne.s32.totalorder %s989_s20, %s689_s6  ;;  %p1055_p0 = scmp.ne.s32.totalorder %s1050_s9, 0 }
  0x6d   : > { %503 = vmatpush3.bf16.msra.mxu0 %v500_v3  ;;  %v512_v12 = vpack.c.bf16 %v227_v11, %v226_v10  ;;  %v516_v15 = vpack.c.bf16 %v229_v14, %v228_v13  ;;  %v230_v16 = vld [vmem:[#allocation5 + $0x50] sm:$0xff]  ;;  %v231_v17 = vld [vmem:[#allocation5 + $0x58] sm:$0xff]  ;;  %v232_v19 = vld [vmem:[#allocation5 + $0x60] sm:$0xff]  ;;  %s766_s16 = smov [#allocation8]  }
  0x6e   : > { %505 = vmatprep.subr.bf16.mxu0 %v504_v5  ;;  %v520_v18 = vpack.c.bf16 %v231_v17, %v230_v16  ;;  %v233_v20 = vld [vmem:[#allocation5 + $0x68] sm:$0xff]  ;;  %v234_v22 = vld [vmem:[#allocation5 + $0x70] sm:$0xff]  ;;  %v235_v23 = vld [vmem:[#allocation5 + $0x78] sm:$0xff]  ;;  %p691_p2 = pnand %p690_p11, %p1055_p0  ;;  %s693_s17 = sshll.u32 %s766_s16, 4  ;;  %s694_s17 = int_to_ptr.vmem [resolvable:$false] %s693_s17 }
  0x6f   : > { %v524_v21 = vpack.c.bf16 %v233_v20, %v232_v19  ;;  %v528_v24 = vpack.c.bf16 %v235_v23, %v234_v22  ;;  %v219_v25 = vld [vmem:[%s974_s22 + $0x8] sm:$0xff]  ;;  %v439_v26 = vld [vmem:[#allocation7] ss:$0 sm:$0xff]  ;;  %s695_s25 = scalar_lea.vmem %s694_s17, 512  ;;  %p696_p7 = scmp.lt.s32.totalorder %s989_s20, %s694_s17 }
  0x70   : > { %p692_p3 = pneg %p691_p2  ;;  %p697_p9 = scmp.lt.s32.totalorder %s695_s25, %s689_s6 }
  0x71   : > { %507 = vmatpush3.bf16.msra.mxu0 %v504_v5 }
  0x72   : > { %509 = vmatprep.subr.bf16.mxu0 %v508_v8  ;;  %p698_p12 = por %p697_p9, %p696_p7 }
  0x74   : > { %p699_p1 = pnand %p698_p12, %p692_p3 }
  0x75   : > { %511 = vmatpush3.bf16.msra.mxu0 %v508_v8 }
  0x76   : > { %513 = vmatprep.subr.bf16.mxu0 %v512_v12 }
  0x79   : > { %515 = vmatpush3.bf16.msra.mxu0 %v512_v12 }
  0x7a   : > { %517 = vmatprep.subr.bf16.mxu0 %v516_v15 }
  0x7d   : > { %519 = vmatpush3.bf16.msra.mxu0 %v516_v15 }
  0x7e   : > { %521 = vmatprep.subr.bf16.mxu0 %v520_v18 }
  0x81   : > { %523 = vmatpush3.bf16.msra.mxu0 %v520_v18 }
  0x82   : > { %525 = vmatprep.subr.bf16.mxu0 %v524_v21 }
  0x85   : > { %527 = vmatpush3.bf16.msra.mxu0 %v524_v21 }
  0x86   : > { %529 = vmatprep.subr.bf16.mxu0 %v528_v24 }
  0x89   : > { %531 = vmatpush3.bf16.msra.mxu0 %v528_v24 }
  0x8c   : > { %498 = vmatmul.mubr.f32.vlgmr.msra.gmra.mrb[0].mxu0 %v219_v25 }
 0x15f   : > { %v499_v27 = vpop.f32.mrb[0].mxu0 }
 0x160   : > { %v315_v28 = vadd.f32 %v499_v27, %v439_v26  ;;  %v309_v29 = vpop.f32.mrb[1].mxu0 }
 0x161   : > { %v310_v30 = vadd.f32 %v439_v26, %v309_v29 }
 0x162   : > { %319 = vst [vmem:[%s215_s18 + $0x8] sm:$0xff] %v315_v28 }
 0x163   : > { %318 = vst [vmem:[%s215_s18] sm:$0xff] %v310_v30 }
 0x164   : > { %702 = shalt.err (!%p699_p1)
}
 0x165   : > { %s703_s11 = scalar_lea.hbm %s994_s28, 256  ;;  %s707_s27 = scalar_lea.hbm %s1041_s3, 512 }
 0x166   : > { %p704_p13 = scmp.ne.s32.totalorder %s994_s28, %s703_s11  ;;  %p708_p4 = scmp.lt.u32.totalorder %s994_s28, %s1041_s3 }
 0x167   : > { %p709_p5 = scmp.lt.u32.totalorder %s707_s27, %s703_s11  ;;  %p711_p11 = scmp.lt.u32.totalorder %s703_s11, %s994_s28 }
 0x168   : > { %p705_p6 = pnand %p704_p13, %p1055_p0 }
 0x169   : > { %p710_p8 = por %p709_p5, %p708_p4 }
 0x16a   : > { %p706_p10 = pneg %p705_p6 }
 0x16b   : > { %p712_p2 = por %p711_p11, %p710_p8 }
 0x16d   : > { %p713_p3 = pnand %p712_p2, %p706_p10 }
 0x16f   : > { %716 = shalt.err (!%p713_p3)
}
 0x170   : > { %s767_s22 = smov 128   ;;  %s768_s18 = smov 8  }
 0x171   : > { %542 = dma.vmem_to_hbm [thread:$0]  (%p1055_p0), %s989_s20, 256, %s994_s28, %s321_s29, %s767_s22, %s767_s22, %s768_s18  }
 0x172 PF: > { %s349_s7 = sand.u32 1, %s747_s12   ;;  %p1056_p7 = scmp.ne.s32.totalorder %s1046_s19, 0 }
 0x173   : > { %p1057_p9 = scmp.ge.s32.totalorder %s759_s15, 2  ;;  %s350_s8 = scalar_lea.sflag [#allocation4], %s349_s7 }
 0x175   : > { %p556_p12 = pnand %p1057_p9, %p1056_p7 }
 0x177   : > { %742 = dma.done.wait (!%p556_p12), %s350_s8, 256  }
 0x178   : > { %744 = vsyncadd (!%p556_p12), %s350_s8, 4294967040  ;;  %p17_p1 = scmp.ge.s32.totalorder %s903_s5, 4   ;;  %s1058_s12 = smov %s751_s13 }
 0x179   : > { %s1059_s13 = smov %s755_s14  ;;  %s1060_s14 = smov %s919_s10 }
 0x17a   : > { %s1061_s15 = smov %s903_s5  ;;  %19 = sbr.rel (!%p17_p1) target bundleno = 6 (0x6), region = 85 }
 0x181   :  { %355 = vsyncpa [#allocation3], 1 }
 0x182   :  { %357 = vsyncpa [#allocation3 + $0x1], 1 }
 0x183   :  { %358 = vsyncpa [#allocation6], 1 }
 0x184   :  { %359 = vsyncpa [#allocation4], 1 }
 0x185   :  { %361 = vsyncpa [#allocation4 + $0x1], 1 }

</bundles_post_ra>
